<compile_context>
chip_gen: v5e
topology: v5e:2x2
jax: 0.10.0
libtpu: 0.0.40
codegen_flags: <defaults>
</compile_context>

<pallas_src>
import functools

import jax
import jax.numpy as jnp
from jax import lax
from jax.experimental import pallas as pl
from jax.experimental.pallas import tpu as pltpu

_LANE = 128


def _round_up(v, m):
    return (v + m - 1) // m * m


def _make_max_pool_kernel(*, sub, n_sub, n_groups, tile_hw, hw, n_hw):
    """Build the streaming row-max kernel with all shape parameters static."""
    neg = -jnp.inf
    # Number of valid lanes inside the *last* hw block (1..tile_hw), static.
    last_valid = hw - (n_hw - 1) * tile_hw

    def kernel(x_ref, o_ref, acc_ref):
        # grid = (row_tiles [parallel], hw_tiles [arbitrary/reduction, last]).
        #   x_ref   : (tile_rows, tile_hw)  streamed input chunk (f32/bf16)
        #   o_ref   : (tile_rows, 1)        per-row max, stored once per row tile
        #   acc_ref : (tile_rows, 128) f32  lane-wide running-max accumulator
        k = pl.program_id(1)

        @pl.when(k == 0)
        def _init():
            acc_ref[...] = jnp.full(acc_ref.shape, neg, acc_ref.dtype)

        # Lane-validity masks only for the (statically known) 128-lane groups
        # that can overrun H*W on the last hw step; all other groups are
        # mask-free.  Built once per grid step (hoisted out of the row loop).
        masked_groups = [g for g in range(n_groups)
                         if (g + 1) * _LANE > last_valid]
        masks = {}
        if masked_groups:
            lane = lax.broadcasted_iota(jnp.int32, (sub, _LANE), 1)
            col0 = k * tile_hw
            for g in masked_groups:
                masks[g] = (col0 + g * _LANE + lane) < hw

        # Sub-block rows so the register-resident accumulator stays <=16 vregs
        # (sub <= 128); load one 128-lane slice at a time straight from the
        # VMEM ref -- never materialize the whole chunk in vregs.
        for s in range(n_sub):
            rows = pl.ds(s * sub, sub)
            m = acc_ref[rows, :]                           # (sub, 128) f32
            for g in range(n_groups):
                sl = x_ref[rows, pl.ds(g * _LANE, _LANE)].astype(jnp.float32)
                if g in masks:
                    sl = jnp.where(masks[g], sl, neg)
                m = jnp.maximum(m, sl)                     # pure VPU elementwise
            acc_ref[rows, :] = m

        @pl.when(k == n_hw - 1)
        def _finalize():
            # One cross-lane (XLU) reduce + one (tile_rows, 1) store per row
            # tile -- epilogue only, hidden under the HBM stream.
            o_ref[...] = jnp.max(acc_ref[...], axis=-1, keepdims=True)

    return kernel


@functools.partial(
    jax.jit, static_argnames=("tile_rows", "tile_hw", "target_block_bytes"))
def plane_estimation_forward(x, weight, bias, *, tile_rows=None, tile_hw=None,
                             target_block_bytes=2 * 1024 * 1024):
    """PlaneEstimationModule forward.

    x: (B, N, C, H, W) float; weight: (3, N*C) (torch Linear layout); bias: (3,).
    Returns (z, pitch, roll), each of shape (B,).
    """
    B, N, C, H, W = x.shape
    NC, HW = N * C, H * W
    R = B * NC

    dtype = x.dtype
    if not jnp.issubdtype(dtype, jnp.floating):
        dtype = jnp.float32
        x = x.astype(dtype)
    itemsize = jnp.dtype(dtype).itemsize

    # Dense 2D slab: rows = B*N*C, lanes = H*W.  Free reshape (contiguous dims).
    xr = x.reshape(R, HW)

    # Packed sublane multiple of the streamed dtype (8 f32, 16 bf16, 32 int8).
    sub_pack = max(8, 32 // itemsize)

    # ---- tile sizing: aim for ~target_block_bytes per streamed block --------
    hw_full = _round_up(HW, _LANE)
    if tile_hw is None:
        th = (target_block_bytes // (128 * itemsize)) // _LANE * _LANE
        tile_hw = min(hw_full, max(_LANE, th))
    else:
        tile_hw = min(hw_full, max(_LANE, _round_up(tile_hw, _LANE)))

    if tile_rows is None:
        tr = target_block_bytes // (tile_hw * itemsize)
        tr = min(max(tr, sub_pack), _round_up(R, sub_pack))
    else:
        tr = max(sub_pack, _round_up(tile_rows, sub_pack))
    if tr > 128:
        tile_rows = max(128, (tr // 128) * 128)  # multiple of 128 -> sub=128 divides
        sub = 128
    else:
        tile_rows = tr
        sub = tile_rows

    n_row_tiles = pl.cdiv(R, tile_rows)
    n_hw_tiles = pl.cdiv(HW, tile_hw)
    n_groups = tile_hw // _LANE
    n_sub = tile_rows // sub

    kernel = _make_max_pool_kernel(
        sub=sub, n_sub=n_sub, n_groups=n_groups,
        tile_hw=tile_hw, hw=HW, n_hw=n_hw_tiles)

    pooled_col = pl.pallas_call(
        kernel,
        out_shape=jax.ShapeDtypeStruct((R, 1), jnp.float32),
        grid_spec=pltpu.PrefetchScalarGridSpec(
            num_scalar_prefetch=0,
            grid=(n_row_tiles, n_hw_tiles),
            in_specs=[pl.BlockSpec((tile_rows, tile_hw), lambda i, k: (i, k))],
            out_specs=pl.BlockSpec((tile_rows, 1), lambda i, k: (i, 0)),
            scratch_shapes=[pltpu.VMEM((tile_rows, _LANE), jnp.float32)],
        ),
        compiler_params=pltpu.CompilerParams(
            dimension_semantics=("parallel", "arbitrary")),
        # TODO(synk): on v7x, pltpu.CORE_PARALLEL on the row axis (2 TCs/chip)
        # could stream row tiles on both TensorCores; kept portable here.
    )(xr)

    # Tiny epilogue (runs exactly once): Linear(N*C, 3) in f32, as in PyTorch.
    pooled = pooled_col[:, 0].reshape(B, NC)
    out = pooled @ weight.astype(jnp.float32).T + bias.astype(jnp.float32)
    return out[:, 0], out[:, 1], out[:, 2]


def _reference_forward(x, weight, bias):
    B, N, C, H, W = x.shape
    xf = x.astype(jnp.float32)
    pooled = jnp.max(xf.reshape(B * N * C, H * W), axis=-1)  # AdaptiveMaxPool2d(1)
    flat = pooled.reshape(B, N * C)
    out = flat @ weight.astype(jnp.float32).T + bias.astype(jnp.float32)
    return out[:, 0], out[:, 1], out[:, 2]


if __name__ == "__main__":
    B, N, C, H, W = 2, 3, 4, 16, 16
    NC = N * C

    key = jax.random.PRNGKey(0)
    x = jax.random.normal(key, (B, N, C, H, W), dtype=jnp.float32)

    # Faithful to the module's __init__: Linear weight/bias filled with 0.0.
    weight_zero = jnp.zeros((3, NC), dtype=jnp.float32)
    bias_zero = jnp.zeros((3,), dtype=jnp.float32)

    # Small explicit tiles => grid (3, 2): exercises k==0 init, streaming
    # accumulate across hw steps, and the k==last finalize path.
    z, pitch, roll = plane_estimation_forward(
        x, weight_zero, bias_zero, tile_rows=8, tile_hw=128)
    jax.block_until_ready((z, pitch, roll))
    z_r, p_r, r_r = _reference_forward(x, weight_zero, bias_zero)
    assert jnp.allclose(z, z_r) and jnp.allclose(pitch, p_r) and jnp.allclose(roll, r_r)

    # Non-zero parameters (validation only) to exercise the pool + linear path.
    kw, kb = jax.random.split(jax.random.PRNGKey(1))
    weight_nz = jax.random.normal(kw, (3, NC), dtype=jnp.float32) * 0.1
    bias_nz = jax.random.normal(kb, (3,), dtype=jnp.float32) * 0.1

    z2, p2, r2 = plane_estimation_forward(
        x, weight_nz, bias_nz, tile_rows=8, tile_hw=128)
    jax.block_until_ready((z2, p2, r2))
    z2_r, p2_r, r2_r = _reference_forward(x, weight_nz, bias_nz)
    assert jnp.allclose(z2, z2_r, atol=1e-5)
    assert jnp.allclose(p2, p2_r, atol=1e-5)
    assert jnp.allclose(r2, r2_r, atol=1e-5)

    # Default (auto) tile sizes: one large block per row tile, no padding copy.
    z3, p3, r3 = plane_estimation_forward(x, weight_nz, bias_nz)
    jax.block_until_ready((z3, p3, r3))
    assert jnp.allclose(z3, z2_r, atol=1e-5)
    assert jnp.allclose(p3, p2_r, atol=1e-5)
    assert jnp.allclose(r3, r2_r, atol=1e-5)

    # bf16 streaming path: input stays bf16 inside the kernel (half the HBM
    # bytes), max is exact; also exercises a partial last row block
    # (tile_rows rounds 8 -> 16 for bf16 sublane packing, R=24).
    x_bf16 = x.astype(jnp.bfloat16)
    z4, p4, r4 = plane_estimation_forward(
        x_bf16, weight_nz, bias_nz, tile_rows=8, tile_hw=128)
    jax.block_until_ready((z4, p4, r4))
    z4_r, p4_r, r4_r = _reference_forward(x_bf16, weight_nz, bias_nz)
    assert jnp.allclose(z4, z4_r, atol=1e-5)
    assert jnp.allclose(p4, p4_r, atol=1e-5)
    assert jnp.allclose(r4, r4_r, atol=1e-5)

    # H*W not a multiple of 128: exercises the in-kernel lane-validity mask
    # (no jnp.pad copy anywhere).
    x_odd = jax.random.normal(jax.random.PRNGKey(2), (B, N, C, 10, 10),
                              dtype=jnp.float32)
    z5, p5, r5 = plane_estimation_forward(
        x_odd, weight_nz, bias_nz, tile_rows=8, tile_hw=128)
    jax.block_until_ready((z5, p5, r5))
    z5_r, p5_r, r5_r = _reference_forward(x_odd, weight_nz, bias_nz)
    assert jnp.allclose(z5, z5_r, atol=1e-5)
    assert jnp.allclose(p5, p5_r, atol=1e-5)
    assert jnp.allclose(r5, r5_r, atol=1e-5)

    print("KERNEL_OK")
</pallas_src>

<mosaic_0001>
module attributes {stable_mosaic.version = 11 : i64} {
  func.func @kernel(%arg0: i32, %arg1: i32, %arg2: memref<8x128xf32, #tpu.memory_space<vmem>>, %arg3: memref<8x1xf32, #tpu.memory_space<vmem>>, %arg4: memref<8x128xf32, #tpu.memory_space<vmem>>) attributes {dimension_semantics = [#tpu.dimension_semantics<parallel>, #tpu.dimension_semantics<arbitrary>], iteration_bounds = array<i64: 3, 2>, scalar_prefetch = 0 : i64, scratch_operands = 1 : i64, tpu.core_type = #tpu.core_type<tc>, window_params = [{transform_indices = @transform_0, window_bounds = array<i64: 8, 128>}, {transform_indices = @transform_1, window_bounds = array<i64: 8, 1>}]} {
    %c0_i32 = arith.constant 0 : i32
    %0 = arith.cmpi eq, %arg1, %c0_i32 : i32
    %1 = arith.extui %0 : i1 to i32
    %c0_i32_0 = arith.constant 0 : i32
    %2 = arith.cmpi ne, %1, %c0_i32_0 : i32
    scf.if %2 {
      %cst = arith.constant 0xFF800000 : f32
      %10 = vector.broadcast %cst : f32 to vector<8x128xf32>
      %c0_7 = arith.constant 0 : index
      %c0_8 = arith.constant 0 : index
      %11 = vector.load %arg4[%c0_7, %c0_8] : memref<8x128xf32, #tpu.memory_space<vmem>>, vector<8x128xf32>
      tpu.vector_store %arg4[%c0_7, %c0_8], %10 {strides = array<i32>} : memref<8x128xf32, #tpu.memory_space<vmem>>, vector<8x128xf32>,
    } else {
    }
    %c0 = arith.constant 0 : index
    %c0_1 = arith.constant 0 : index
    %3 = vector.load %arg4[%c0, %c0_1] : memref<8x128xf32, #tpu.memory_space<vmem>>, vector<8x128xf32>
    %c0_2 = arith.constant 0 : index
    %c0_3 = arith.constant 0 : index
    %4 = vector.load %arg2[%c0_2, %c0_3] : memref<8x128xf32, #tpu.memory_space<vmem>>, vector<8x128xf32>
    %5 = arith.maximumf %3, %4 : vector<8x128xf32>
    %c0_4 = arith.constant 0 : index
    %c0_5 = arith.constant 0 : index
    %6 = vector.load %arg4[%c0_4, %c0_5] : memref<8x128xf32, #tpu.memory_space<vmem>>, vector<8x128xf32>
    tpu.vector_store %arg4[%c0_4, %c0_5], %5 {strides = array<i32>} : memref<8x128xf32, #tpu.memory_space<vmem>>, vector<8x128xf32>,
    %c1_i32 = arith.constant 1 : i32
    %7 = arith.cmpi eq, %arg1, %c1_i32 : i32
    %8 = arith.extui %7 : i1 to i32
    %c0_i32_6 = arith.constant 0 : i32
    %9 = arith.cmpi ne, %8, %c0_i32_6 : i32
    scf.if %9 {
      %c0_7 = arith.constant 0 : index
      %c0_8 = arith.constant 0 : index
      %10 = vector.load %arg4[%c0_7, %c0_8] : memref<8x128xf32, #tpu.memory_space<vmem>>, vector<8x128xf32>
      %cst = arith.constant dense<0xFF800000> : vector<8xf32>
      %11 = vector.multi_reduction <maximumf>, %10, %cst [1] : vector<8x128xf32> to vector<8xf32>
      %12 = vector.shape_cast %11 : vector<8xf32> to vector<8x1xf32>
      %c0_9 = arith.constant 0 : index
      %c0_10 = arith.constant 0 : index
      %13 = vector.load %arg3[%c0_9, %c0_10] : memref<8x1xf32, #tpu.memory_space<vmem>>, vector<8x1xf32>
      tpu.vector_store %arg3[%c0_9, %c0_10], %12 {strides = array<i32>} : memref<8x1xf32, #tpu.memory_space<vmem>>, vector<8x1xf32>,
    } else {
    }
    return
  }
  func.func @transform_0(%arg0: i32, %arg1: i32) -> (i32, i32) {
    %c0_i32 = arith.constant 0 : i32
    return %arg0, %arg1 : i32, i32
  }
  func.func @transform_1(%arg0: i32, %arg1: i32) -> (i32, i32) {
    %c0_i32 = arith.constant 0 : i32
    %c0_i32_0 = arith.constant 0 : i32
    return %arg0, %c0_i32 : i32, i32
  }
}

</mosaic_0001>

<bundles_post_ra>
// kernel: squeeze.4
= control target key start
LH: loop header
LB: loop body
LE: loop exit
PB: predicated region body
PF: predicated region fallthrough
CT: control target
= control target key end

     0   :  { %vm18_vm0 = vcmask 97280   ;;  %s51_s0 = inlined_call_operand.vmem [shape: bf16[24], index: 0, kind: input, shape index: {}]   ;;  %s52_s1 = inlined_call_operand.vmem [shape: bf16[2,12], index: 1, kind: output, shape index: {}]  }
   0x1   :  { %v13_v0 = vld [vmem:[%s51_s0] sm:$0x1]  ;;  %s34_s0 = smov 116  }
   0x2   :  { %v14_v1 = vunpack.c.l.bf16 %v13_v0 }
   0x4   :  { %16 = vst [vmem:[#allocation1] sm:$0x3] %v14_v1 }
   0xb   :  { %v20_v2 = vld [vmem:[#allocation1] sm:$0x1]  }
   0xc   :  { %v17_v3 = vld [vmem:[#allocation1] sm:$0x1]   ;;  %21 = vrot.lane.b32.xlu0 %v20_v2, %s34_s0 }
   0xd   :  { %19 = vst.msk [vmem:[#allocation0] sm:$0x1] %vm18_vm0, %v17_v3  }
  0x7e   :  { %v22_v4 = vpop.permute.xlu0 %21  }
  0x7f   :  { %25 = vst.msk [vmem:[#allocation0 + $0x1] sm:$0x1] %vm18_vm0, %v22_v4  }
  0x86   :  { %v28_v5 = vld [vmem:[#allocation0] sm:$0x3] }
  0x87   :  { %v29_v6 = vpack.c.bf16 0.0, %v28_v5 }
  0x89   :  { %32 = vst [vmem:[%s52_s1] sm:$0x1] %v29_v6 }

// kernel: plane_estimation_forward.1
= control target key start
LH: loop header
LB: loop body
LE: loop exit
PB: predicated region body
PF: predicated region fallthrough
CT: control target
= control target key end

     0   :  { %s330_s6 = smov 0   ;;  %s332_s7 = smov 0   ;;  %s387_s0 = inlined_call_operand.vmem [shape: f32[24,256], index: 0, kind: input, shape index: {}]   ;;  %s388_s1 = inlined_call_operand.vmem [shape: f32[24,1], index: 1, kind: output, shape index: {}]  }
   0x1   :  { %s334_s8 = smov 0   ;;  %s336_s9 = smov 0  }
   0x2   :  { %s338_s10 = smov 0  }
   0x3 LB: > { %s20_s11 = sadd.s32 1, %s309_s8  ;;  %s23_s12 = sadd.s32 1, %s313_s9  ;;  %s317_s10 = sphi %s338_s10, %s11_s10   ;;  %s313_s9 = sphi %s336_s9, %s392_s9   ;;  %s309_s8 = sphi %s334_s8, %s391_s8   ;;  %s305_s7 = sphi %s332_s7, %s390_s7   ;;  %s301_s6 = sphi %s330_s6, %s389_s6  }
   0x4   : > { %p21_p0 = scmp.ge.s32.totalorder %s20_s11, 2  ;;  %p230_p1 = scmp.ge.s32.totalorder %s317_s10, 1 }
   0x5   : > { %p104_p2 = scmp.lt.s32.totalorder %s317_s10, 7 }
   0x6   : > { %s394_s11 = smov (%p21_p0, %s20_s11), 0  ;;  %s396_s12 = smov (!%p21_p0, %s23_s12), %s313_s9 }
   0x7   : > { %p105_p3 = pnand %p230_p1, %p104_p2  ;;  %p25_p4 = scmp.ge.s32.totalorder %s396_s12, 3 }
   0x8   : > { %p126_p5 = scmp.lt.s32.totalorder (!%p105_p3), %s305_s7, 2  ;;  %p128_p6 = scmp.lt.s32.totalorder (!%p105_p3), %s301_s6, 1 }
   0x9   : > { %s398_s12 = smov (%p25_p4, %s396_s12), 0  ;;  %108 = sbr.rel (%p105_p3) target bundleno = 159 (0x9f), region = 24 }
   0xa   : > { %p234_p7 = scmp.ne.s32.totalorder (!%p105_p3), %s301_s6, 0 }
   0xe   : > { %s400_s7 = smov (!%p126_p5, %s305_s7), 2 }
   0xf   : > { %s129_s13 = scalar_select %p128_p6, %s301_s6, 1 }
  0x10   : > { %s231_s14 = sshll.u32 %s400_s7, 1  ;;  %s233_s15 = sshll.u32 %s400_s7, 3 }
  0x11   : > { %s131_s16 = sadd.s32 %s231_s14, %s129_s13  ;;  %s137_s19 = scalar_lea.vmem %s388_s1, %s233_s15 }
  0x12   : > { %s232_s20 = sshll.u32 %s131_s16, 3  ;;  %141 = sbr.rel (%p234_p7) target bundleno = 25 (0x19), region = 28 }
  0x13   : > { %s133_s23 = scalar_lea.vmem %s387_s0, %s232_s20 }
  0x17   : > { %v319_v0 = vmov -inf  }
  0x18   : > { %142 = vst [vmem:[#allocation2] sm:$0xff] %v319_v0 }
  0x19 PF: > { %v144_v2 = vld [vmem:[%s133_s23] sm:$0xff]  ;;  %p235_p8 = scmp.ne.s32.totalorder %s301_s6, 1 }
  0x1e   : > { %150 = sbr.rel (%p235_p8) target bundleno = 159 (0x9f), region = 32 }
  0x1f   : > { %v143_v1 = vld [vmem:[#allocation2] sm:$0xff] }
  0x20   : > { %v145_v3 = vmax.f32 %v143_v1, %v144_v2 }
  0x22   : > { %146 = vst [vmem:[#allocation2] sm:$0xff] %v145_v3 }
  0x23   : > { %vm154_vm0 = vcmask 7168  }
  0x29   : > { %v151_v4 = vld [vmem:[#allocation2] sm:$0xff] }
  0x2a   : > { %152 = vmax.xlane.f32.xlu0 %v151_v4 }
  0x9d   : > { %v153_v5 = vpop.xlane.xlu0 %152 }
  0x9e   : > { %155 = vst.msk [vmem:[%s137_s19] sm:$0xff] %vm154_vm0, %v153_v5 }
  0x9f PF: > { %s11_s10 = sadd.s32 1, %s317_s10   ;;  %s389_s6 = smov %s309_s8 }
  0xa0   : > { %p8_p9 = scmp.ge.s32.totalorder %s11_s10, 8   ;;  %s390_s7 = smov %s313_s9 }
  0xa1   : > { %s391_s8 = smov %s394_s11  ;;  %s392_s9 = smov %s398_s12 }
  0xa2   :  { %10 = sbr.rel (!%p8_p9) target bundleno = 3 (0x3), region = 62 }

</bundles_post_ra>
